<compile_context>
chip_gen: v7x
topology: tpu7x:2x2x1
jax: 0.10.0
libtpu: 0.0.40
codegen_flags: <defaults>
</compile_context>

<pallas_src>
import functools

import jax
import jax.numpy as jnp
from jax.experimental import pallas as pl
from jax.experimental.pallas import tpu as pltpu


def _round_up(n, m):
    return ((n + m - 1) // m) * m


def _pad2(a, rows, cols):
    pr, pc = rows - a.shape[0], cols - a.shape[1]
    if pr or pc:
        a = jnp.pad(a, ((0, pr), (0, pc)))
    return a


def _cac_kernel(x_ref, w1_ref, b1_ref, wh_ref, bh_ref, out_ref, *, action_dim, head_pad):
    # body: phi = ReLU(x @ W1 + b1); matmul inputs bf16, accumulate f32, elementwise in f32.
    phi = jnp.dot(x_ref[...], w1_ref[...], preferred_element_type=jnp.float32)
    phi = jnp.maximum(phi + b1_ref[...], 0.0)

    # fused head: columns [0:A) = fc_action logits, column A = fc_critic V, rest zero-padded.
    wh = wh_ref[...]
    head = jnp.dot(phi.astype(wh.dtype), wh, preferred_element_type=jnp.float32)
    head = head + bh_ref[...]                                  # (TM, head_pad), head_pad = 128

    lane = jax.lax.broadcasted_iota(jnp.int32, head.shape, 1)
    act_mask = lane < action_dim

    # masked, numerically-stable softmax over the padded action lanes (pads -> exactly 0 prob)
    neg = jnp.float32(-1e30)
    masked_logits = jnp.where(act_mask, head, neg)
    m = jnp.max(masked_logits, axis=-1, keepdims=True)
    e = jnp.exp(masked_logits - m)
    s = jnp.sum(e, axis=-1, keepdims=True)
    probs = e / s
    log_probs = masked_logits - (m + jnp.log(s))
    entropy = -jnp.sum(probs * log_probs, axis=-1, keepdims=True)   # pad lanes contribute 0

    # V = head column `action_dim`
    v = jnp.sum(jnp.where(lane == action_dim, head, 0.0), axis=-1, keepdims=True)

    # (entropy, V) packed into lanes 0 and 1 of a 128-wide slab
    ev = jnp.where(lane == 0, entropy, 0.0) + jnp.where(lane == 1, v, 0.0)

    # three aligned, unmasked 128-wide stores into the (TM, 3*head_pad) lane-dense output
    out_ref[:, 0:head_pad] = probs
    out_ref[:, head_pad:2 * head_pad] = log_probs
    out_ref[:, 2 * head_pad:3 * head_pad] = ev


def categorical_actor_critic_forward(obs, w_body, b_body, w_action, b_action,
                                     w_critic, b_critic, *, action=None, key=None,
                                     block_m=512, matmul_dtype=jnp.bfloat16):
    """Pallas forward of CategoricalActorCriticNet. Weights are stored (in, out)."""
    B, S = obs.shape
    F = w_body.shape[1]
    A = w_action.shape[1]

    S_pad = _round_up(S, 128)
    F_pad = _round_up(F, 128)
    HP = _round_up(A + 1, 128)          # fused head width: A logits + 1 value, lane-dense
    OUT_W = 3 * HP

    tm = min(block_m, _round_up(B, 8))
    B_pad = _round_up(B, tm)

    # --- parameter / input padding (zeros are exact for these linear layers) ---
    x_p = _pad2(obs, B_pad, S).astype(matmul_dtype)
    x_p = _pad2(x_p, B_pad, S_pad)
    w1_p = _pad2(w_body, S_pad, F_pad).astype(matmul_dtype)
    b1_p = _pad2(b_body.reshape(1, -1).astype(jnp.float32), 1, F_pad)

    w_head = jnp.zeros((F_pad, HP), jnp.float32)
    w_head = w_head.at[:F, :A].set(w_action).at[:F, A].set(w_critic[:, 0])
    w_head = w_head.astype(matmul_dtype)
    b_head = jnp.zeros((1, HP), jnp.float32)
    b_head = b_head.at[:, :A].set(b_action.reshape(1, -1)).at[:, A].set(b_critic.reshape(())[()])

    kernel = functools.partial(_cac_kernel, action_dim=A, head_pad=HP)

    out = pl.pallas_call(
        kernel,
        out_shape=jax.ShapeDtypeStruct((B_pad, OUT_W), jnp.float32),
        grid_spec=pltpu.PrefetchScalarGridSpec(
            num_scalar_prefetch=0,
            grid=(B_pad // tm,),
            in_specs=[
                pl.BlockSpec((tm, S_pad), lambda i: (i, 0)),      # batch tile of obs
                pl.BlockSpec((S_pad, F_pad), lambda i: (0, 0)),   # body weight, resident
                pl.BlockSpec((1, F_pad), lambda i: (0, 0)),       # body bias, resident
                pl.BlockSpec((F_pad, HP), lambda i: (0, 0)),      # fused head weight, resident
                pl.BlockSpec((1, HP), lambda i: (0, 0)),          # fused head bias, resident
            ],
            out_specs=pl.BlockSpec((tm, OUT_W), lambda i: (i, 0)),
        ),
        compiler_params=pltpu.CompilerParams(
            dimension_semantics=("parallel",),                    # shard batch across TCs (v7x)
            vmem_limit_bytes=32 * 1024 * 1024,                    # sized for v7x's smaller VMEM
        ),
    )(x_p, w1_p, b1_p, w_head, b_head)

    out = out[:B]
    probs = out[:, :A]
    log_probs = out[:, HP:HP + A]
    entropy = out[:, 2 * HP:2 * HP + 1]
    v = out[:, 2 * HP + 1:2 * HP + 2]

    # --- wrapper glue (matches the torch.distributions.Categorical bookkeeping) ---
    if action is None:
        if key is None:
            key = jax.random.PRNGKey(0)
        action = jax.random.categorical(key, log_probs, axis=-1).reshape(-1, 1)
    else:
        action = action.reshape(-1, 1)
    log_pi_a = jnp.take_along_axis(log_probs, action, axis=-1)

    return {'a': action, 'log_pi_a': log_pi_a, 'entropy': entropy, 'V': v, 'probs': probs}


if __name__ == "__main__":
    # Small but lane-aligned shapes (state/feature dims padded to 128 per model construction).
    batch = 256
    state_dim = 128
    feature_dim = 128
    action_dim = 8
    block_m = 128            # grid = (2,): exercises batch tiling + parallel semantics

    key = jax.random.PRNGKey(0)
    k_x, k_wb, k_bb, k_wa, k_ba, k_wv, k_bv, k_s = jax.random.split(key, 8)

    obs = jax.random.normal(k_x, (batch, state_dim), dtype=jnp.float32)
    # body (FCBody-style) parameters
    w_body = (1.0 / jnp.sqrt(state_dim)) * jax.random.normal(k_wb, (state_dim, feature_dim), jnp.float32)
    b_body = 0.01 * jax.random.normal(k_bb, (feature_dim,), jnp.float32)
    # layer_init(..., 0.001)-style small heads
    w_action = 0.001 * jax.random.normal(k_wa, (feature_dim, action_dim), jnp.float32)
    b_action = 0.001 * jax.random.normal(k_ba, (action_dim,), jnp.float32)
    w_critic = 0.001 * jax.random.normal(k_wv, (feature_dim, 1), jnp.float32)
    b_critic = 0.001 * jax.random.normal(k_bv, (1,), jnp.float32)

    pred = categorical_actor_critic_forward(
        obs, w_body, b_body, w_action, b_action, w_critic, b_critic,
        action=None, key=k_s, block_m=block_m, matmul_dtype=jnp.bfloat16)
    pred = jax.block_until_ready(pred)

    # ---- pure-JAX reference (same bf16-matmul / f32-accumulate recipe) ----
    xb = obs.astype(jnp.bfloat16)
    phi_ref = jnp.maximum(
        jnp.dot(xb, w_body.astype(jnp.bfloat16), preferred_element_type=jnp.float32)
        + b_body.reshape(1, -1), 0.0)
    phib = phi_ref.astype(jnp.bfloat16)
    logits_ref = jnp.dot(phib, w_action.astype(jnp.bfloat16),
                         preferred_element_type=jnp.float32) + b_action.reshape(1, -1)
    v_ref = jnp.dot(phib, w_critic.astype(jnp.bfloat16),
                    preferred_element_type=jnp.float32) + b_critic.reshape(1, -1)
    probs_ref = jax.nn.softmax(logits_ref, axis=-1)
    logp_ref = jax.nn.log_softmax(logits_ref, axis=-1)
    ent_ref = -jnp.sum(probs_ref * logp_ref, axis=-1, keepdims=True)
    log_pi_a_ref = jnp.take_along_axis(logp_ref, pred['a'], axis=-1)

    assert pred['probs'].shape == (batch, action_dim)
    assert pred['V'].shape == (batch, 1)
    assert pred['entropy'].shape == (batch, 1)
    assert pred['a'].shape == (batch, 1)
    assert pred['log_pi_a'].shape == (batch, 1)
    assert jnp.allclose(pred['probs'], probs_ref, atol=1e-4, rtol=1e-4)
    assert jnp.allclose(pred['entropy'], ent_ref, atol=1e-4, rtol=1e-4)
    assert jnp.allclose(pred['V'], v_ref, atol=1e-4, rtol=1e-4)
    assert jnp.allclose(pred['log_pi_a'], log_pi_a_ref, atol=1e-4, rtol=1e-4)

    print("KERNEL_OK")
</pallas_src>

<mosaic_0001>
module attributes {stable_mosaic.version = 11 : i64} {
  func.func @_cac_kernel(%arg0: i32, %arg1: memref<128x128xbf16, #tpu.memory_space<vmem>>, %arg2: memref<128x128xbf16, #tpu.memory_space<vmem>>, %arg3: memref<1x128xf32, #tpu.memory_space<vmem>>, %arg4: memref<128x128xbf16, #tpu.memory_space<vmem>>, %arg5: memref<1x128xf32, #tpu.memory_space<vmem>>, %arg6: memref<128x384xf32, #tpu.memory_space<vmem>>) attributes {dimension_semantics = [#tpu.dimension_semantics<parallel>], iteration_bounds = array<i64: 2>, scalar_prefetch = 0 : i64, scratch_operands = 0 : i64, tpu.core_type = #tpu.core_type<tc>, window_params = [{transform_indices = @transform_0, window_bounds = array<i64: 128, 128>}, {pipeline_mode = #tpu.pipeline_mode<synchronous>, transform_indices = @transform_1, window_bounds = array<i64: 128, 128>}, {pipeline_mode = #tpu.pipeline_mode<synchronous>, transform_indices = @transform_2, window_bounds = array<i64: 1, 128>}, {pipeline_mode = #tpu.pipeline_mode<synchronous>, transform_indices = @transform_3, window_bounds = array<i64: 128, 128>}, {pipeline_mode = #tpu.pipeline_mode<synchronous>, transform_indices = @transform_4, window_bounds = array<i64: 1, 128>}, {transform_indices = @transform_5, window_bounds = array<i64: 128, 384>}]} {
    %c0 = arith.constant 0 : index
    %c0_0 = arith.constant 0 : index
    %0 = vector.load %arg1[%c0, %c0_0] : memref<128x128xbf16, #tpu.memory_space<vmem>>, vector<128x128xbf16>
    %c0_1 = arith.constant 0 : index
    %c0_2 = arith.constant 0 : index
    %1 = vector.load %arg2[%c0_1, %c0_2] : memref<128x128xbf16, #tpu.memory_space<vmem>>, vector<128x128xbf16>
    %cst = arith.constant dense<0.000000e+00> : vector<128x128xf32>
    %2 = tpu.matmul %0, %1, %cst {dimension_numbers = #tpu.dot_dimension_numbers<[1], [0], [0], [1], [0, 0, 1, 1], [], []>} : vector<128x128xbf16>, vector<128x128xbf16>, vector<128x128xf32> -> vector<128x128xf32>
    %c0_3 = arith.constant 0 : index
    %c0_4 = arith.constant 0 : index
    %3 = vector.load %arg3[%c0_3, %c0_4] : memref<1x128xf32, #tpu.memory_space<vmem>>, vector<1x128xf32>
    %4 = vector.broadcast %3 : vector<1x128xf32> to vector<128x128xf32>
    %5 = arith.addf %2, %4 : vector<128x128xf32>
    %cst_5 = arith.constant 0.000000e+00 : f32
    %6 = vector.broadcast %cst_5 : f32 to vector<128x128xf32>
    %7 = arith.maximumf %5, %6 : vector<128x128xf32>
    %c0_6 = arith.constant 0 : index
    %c0_7 = arith.constant 0 : index
    %8 = vector.load %arg4[%c0_6, %c0_7] : memref<128x128xbf16, #tpu.memory_space<vmem>>, vector<128x128xbf16>
    %9 = arith.truncf %7 : vector<128x128xf32> to vector<128x128xbf16>
    %cst_8 = arith.constant dense<0.000000e+00> : vector<128x128xf32>
    %10 = tpu.matmul %9, %8, %cst_8 {dimension_numbers = #tpu.dot_dimension_numbers<[1], [0], [0], [1], [0, 0, 1, 1], [], []>} : vector<128x128xbf16>, vector<128x128xbf16>, vector<128x128xf32> -> vector<128x128xf32>
    %c0_9 = arith.constant 0 : index
    %c0_10 = arith.constant 0 : index
    %11 = vector.load %arg5[%c0_9, %c0_10] : memref<1x128xf32, #tpu.memory_space<vmem>>, vector<1x128xf32>
    %12 = vector.broadcast %11 : vector<1x128xf32> to vector<128x128xf32>
    %13 = arith.addf %10, %12 : vector<128x128xf32>
    %14 = tpu.iota {dimensions = array<i32: 1>} : vector<128x128xi32>
    %c8_i32 = arith.constant 8 : i32
    %15 = vector.broadcast %c8_i32 : i32 to vector<128x128xi32>
    %16 = arith.cmpi slt, %14, %15 : vector<128x128xi32>
    %cst_11 = arith.constant -1.000000e+30 : f32
    %17 = vector.broadcast %cst_11 : f32 to vector<128x128xf32>
    %18 = arith.select %16, %13, %17 : vector<128x128xi1>, vector<128x128xf32>
    %cst_12 = arith.constant dense<0xFF800000> : vector<128xf32>
    %19 = vector.multi_reduction <maximumf>, %18, %cst_12 [1] : vector<128x128xf32> to vector<128xf32>
    %20 = vector.shape_cast %19 : vector<128xf32> to vector<128x1xf32>
    %21 = vector.broadcast %20 : vector<128x1xf32> to vector<128x128xf32>
    %22 = arith.subf %18, %21 : vector<128x128xf32>
    %23 = math.exp %22 : vector<128x128xf32>
    %cst_13 = arith.constant dense<0.000000e+00> : vector<128xf32>
    %24 = vector.multi_reduction <add>, %23, %cst_13 [1] : vector<128x128xf32> to vector<128xf32>
    %25 = vector.shape_cast %24 : vector<128xf32> to vector<128x1xf32>
    %26 = vector.broadcast %25 : vector<128x1xf32> to vector<128x128xf32>
    %27 = arith.divf %23, %26 : vector<128x128xf32>
    %28 = math.log %25 : vector<128x1xf32>
    %29 = arith.addf %20, %28 : vector<128x1xf32>
    %30 = vector.broadcast %29 : vector<128x1xf32> to vector<128x128xf32>
    %31 = arith.subf %18, %30 : vector<128x128xf32>
    %32 = arith.mulf %27, %31 : vector<128x128xf32>
    %cst_14 = arith.constant dense<0.000000e+00> : vector<128xf32>
    %33 = vector.multi_reduction <add>, %32, %cst_14 [1] : vector<128x128xf32> to vector<128xf32>
    %34 = vector.shape_cast %33 : vector<128xf32> to vector<128x1xf32>
    %cst_15 = arith.constant 0.000000e+00 : f32
    %35 = vector.broadcast %cst_15 : f32 to vector<128x1xf32>
    %36 = arith.subf %35, %34 : vector<128x1xf32>
    %c8_i32_16 = arith.constant 8 : i32
    %37 = vector.broadcast %c8_i32_16 : i32 to vector<128x128xi32>
    %38 = arith.cmpi eq, %14, %37 : vector<128x128xi32>
    %cst_17 = arith.constant 0.000000e+00 : f32
    %39 = vector.broadcast %cst_17 : f32 to vector<128x128xf32>
    %40 = arith.select %38, %13, %39 : vector<128x128xi1>, vector<128x128xf32>
    %cst_18 = arith.constant dense<0.000000e+00> : vector<128xf32>
    %41 = vector.multi_reduction <add>, %40, %cst_18 [1] : vector<128x128xf32> to vector<128xf32>
    %42 = vector.shape_cast %41 : vector<128xf32> to vector<128x1xf32>
    %c0_i32 = arith.constant 0 : i32
    %43 = vector.broadcast %c0_i32 : i32 to vector<128x128xi32>
    %44 = arith.cmpi eq, %14, %43 : vector<128x128xi32>
    %cst_19 = arith.constant 0.000000e+00 : f32
    %45 = vector.shape_cast %36 : vector<128x1xf32> to vector<128x1xf32>
    %46 = vector.broadcast %45 : vector<128x1xf32> to vector<128x128xf32>
    %47 = vector.broadcast %cst_19 : f32 to vector<128x128xf32>
    %48 = arith.select %44, %46, %47 : vector<128x128xi1>, vector<128x128xf32>
    %c1_i32 = arith.constant 1 : i32
    %49 = vector.broadcast %c1_i32 : i32 to vector<128x128xi32>
    %50 = arith.cmpi eq, %14, %49 : vector<128x128xi32>
    %cst_20 = arith.constant 0.000000e+00 : f32
    %51 = vector.shape_cast %42 : vector<128x1xf32> to vector<128x1xf32>
    %52 = vector.broadcast %51 : vector<128x1xf32> to vector<128x128xf32>
    %53 = vector.broadcast %cst_20 : f32 to vector<128x128xf32>
    %54 = arith.select %50, %52, %53 : vector<128x128xi1>, vector<128x128xf32>
    %55 = arith.addf %48, %54 : vector<128x128xf32>
    %c0_21 = arith.constant 0 : index
    %c0_22 = arith.constant 0 : index
    %56 = vector.load %arg6[%c0_21, %c0_22] : memref<128x384xf32, #tpu.memory_space<vmem>>, vector<128x128xf32>
    tpu.vector_store %arg6[%c0_21, %c0_22], %27 {strides = array<i32>} : memref<128x384xf32, #tpu.memory_space<vmem>>, vector<128x128xf32>,
    %c0_23 = arith.constant 0 : index
    %c128 = arith.constant 128 : index
    %57 = vector.load %arg6[%c0_23, %c128] : memref<128x384xf32, #tpu.memory_space<vmem>>, vector<128x128xf32>
    tpu.vector_store %arg6[%c0_23, %c128], %31 {strides = array<i32>} : memref<128x384xf32, #tpu.memory_space<vmem>>, vector<128x128xf32>,
    %c0_24 = arith.constant 0 : index
    %c256 = arith.constant 256 : index
    %58 = vector.load %arg6[%c0_24, %c256] : memref<128x384xf32, #tpu.memory_space<vmem>>, vector<128x128xf32>
    tpu.vector_store %arg6[%c0_24, %c256], %55 {strides = array<i32>} : memref<128x384xf32, #tpu.memory_space<vmem>>, vector<128x128xf32>,
    return
  }
  func.func @transform_0(%arg0: i32) -> (i32, i32) {
    %c0_i32 = arith.constant 0 : i32
    %c0_i32_0 = arith.constant 0 : i32
    return %arg0, %c0_i32 : i32, i32
  }
  func.func @transform_1(%arg0: i32) -> (i32, i32) {
    %c0_i32 = arith.constant 0 : i32
    %c0_i32_0 = arith.constant 0 : i32
    %c0_i32_1 = arith.constant 0 : i32
    return %c0_i32, %c0_i32_0 : i32, i32
  }
  func.func @transform_2(%arg0: i32) -> (i32, i32) {
    %c0_i32 = arith.constant 0 : i32
    %c0_i32_0 = arith.constant 0 : i32
    %c0_i32_1 = arith.constant 0 : i32
    return %c0_i32, %c0_i32_0 : i32, i32
  }
  func.func @transform_3(%arg0: i32) -> (i32, i32) {
    %c0_i32 = arith.constant 0 : i32
    %c0_i32_0 = arith.constant 0 : i32
    %c0_i32_1 = arith.constant 0 : i32
    return %c0_i32, %c0_i32_0 : i32, i32
  }
  func.func @transform_4(%arg0: i32) -> (i32, i32) {
    %c0_i32 = arith.constant 0 : i32
    %c0_i32_0 = arith.constant 0 : i32
    %c0_i32_1 = arith.constant 0 : i32
    return %c0_i32, %c0_i32_0 : i32, i32
  }
  func.func @transform_5(%arg0: i32) -> (i32, i32) {
    %c0_i32 = arith.constant 0 : i32
    %c0_i32_0 = arith.constant 0 : i32
    return %arg0, %c0_i32 : i32, i32
  }
}

</mosaic_0001>

<bundles_post_ra>
// kernel: tpu_custom_call.1
= control target key start
LH: loop header
LB: loop body
LE: loop exit
PB: predicated region body
PF: predicated region fallthrough
CT: control target
= control target key end

     0   :  { %10 = vsyncpa [#allocation3], 0  ;;  %s2500_s0 = inlined_call_operand.hbm [shape: bf16[256,128], index: 0, kind: input, shape index: {}]   ;;  %s2501_s1 = inlined_call_operand.hbm [shape: bf16[128,128], index: 1, kind: input, shape index: {}]   ;;  %s2502_s2 = inlined_call_operand.vmem [shape: f32[1,128], index: 2, kind: input, shape index: {}]   ;;  %s2503_s3 = inlined_call_operand.hbm [shape: bf16[128,128], index: 3, kind: input, shape index: {}]   ;;  %s2504_s4 = inlined_call_operand.vmem [shape: f32[1,128], index: 4, kind: input, shape index: {}]   ;;  %s2505_s5 = inlined_call_operand.hbm [shape: f32[256,384], index: 5, kind: output, shape index: {}]  }
   0x1   :  { %12 = vsyncpa [#allocation3 + $0x1], 0 }
   0x2   :  { %13 = vsyncpa [#allocation6], 0 }
   0x3   :  { %14 = vsyncpa [#allocation4], 0 }
   0x4   :  { %16 = vsyncpa [#allocation4 + $0x1], 0  ;;  %s1773_s18 = smov 0   ;;  %s1775_s19 = smov 0  }
   0x5   :  { %s1777_s20 = smov 0   ;;  %s1779_s21 = smov 0  }
   0x6 LB: > { %s1794_s22 = sadd.s32 4294967295, %s1733_s21   ;;  %s1244_s23 = sadd.s32 4294967294, %s1733_s21   ;;  %s1733_s21 = sphi %s1779_s21, %s2538_s21   ;;  %s1729_s20 = sphi %s1777_s20, %s2537_s20   ;;  %s1725_s19 = sphi %s1775_s19, %s2536_s19   ;;  %s1721_s18 = sphi %s1773_s18, %s2535_s18  }
   0x7   : > { %p42_p0 = scmp.ne.s32.totalorder %s1725_s19, %s1721_s18  ;;  %p2506_p1 = scmp.eq.s32.totalorder %s1794_s22, 0 }
   0x8   : > { %p156_p3 = scmp.eq.s32.totalorder %s1244_s23, 1  ;;  %p1245_p5 = scmp.ge.s32.totalorder %s1733_s21, 1 }
   0x9   : > { %p1803_p4 = por %p2506_p1, %p42_p0  ;;  %p163_p7 = scmp.lt.s32.totalorder %s1733_s21, 3 }
   0xa   : > { %p1808_p6 = por %p156_p3, %p42_p0  ;;  %s1735_s27 = smov [#allocation5]  }
   0xb   : > { %s2512_s24 = scalar_select %p1803_p4, 1, 0 }
   0xc   : > { %s2513_s25 = scalar_select %p1808_p6, 1, 0 }
   0xd   : > { %p1813_p8 = pnand %p1245_p5, %p163_p7  ;;  %s175_s28 = sshll.u32 %s1735_s27, 4  ;;  %s1817_s28 = int_to_ptr.vmem [resolvable:$true] %s175_s28 }
   0xe   : > { %s1736_s30 = smov [#allocation7]   ;;  %s1577_s9 = scalar_lea.hbm %s2501_s1, 1024 }
   0xf   : > { %p1398_p9 = pneg %p1813_p8  ;;  %s191_s6 = sshll.u32 %s1736_s30, 4  ;;  %s1828_s6 = int_to_ptr.vmem [resolvable:$true] %s191_s6 }
  0x10   : > { %p1578_p12 = scmp.ne.s32.totalorder %s2501_s1, %s1577_s9  ;;  %p1584_p5 = scmp.lt.u32.totalorder %s1577_s9, %s2501_s1 }
  0x11   : > { %p1824_p11 = pnand %p1398_p9, %p2506_p1 }
  0x13   : > { %p1579_p13 = pneg %p1824_p11 }
  0x15   : > { %p1580_p0 = pnand %p1579_p13, %p1578_p12 }
  0x17   : > { %p1581_p3 = pneg %p1580_p0 }
  0x19   : > { %p1586_p7 = pnand %p1584_p5, %p1581_p3 }
  0x1b   : > { %1589 = shalt.err (!%p1586_p7)
}
  0x1c   : > { %s1590_s14 = scalar_lea.vmem %s1817_s28, 1024  ;;  %p1598_p2 = scmp.lt.s32.totalorder %s1817_s28, %s1817_s28 }
  0x1d   : > { %p1591_p9 = scmp.ne.s32.totalorder %s1817_s28, %s1590_s14  ;;  %p1599_p12 = scmp.lt.s32.totalorder %s1590_s14, %s1590_s14 }
  0x1f   : > { %p1593_p10 = pnand %p1591_p9, %p1579_p13  ;;  %p1600_p0 = por %p1599_p12, %p1598_p2 }
  0x21   : > { %p1594_p1 = pneg %p1593_p10 }
  0x23   : > { %p1601_p6 = pnand %p1600_p0, %p1594_p1 }
  0x25   : > { %1604 = shalt.err (!%p1601_p6)
}
  0x26   : > { %s1737_s15 = smov 64   ;;  %s1738_s16 = smov 4  }
  0x27   : > { %1401 = dma.hbm_to_vmem [thread:$0]  (!%p1824_p11), %s2501_s1, 1024, %s1817_s28, [#allocation6], %s1737_s15, %s1737_s15, %s1738_s16  }
  0x28   : > { %s1605_s7 = scalar_lea.hbm %s2503_s3, 1024 }
  0x29   : > { %p1606_p1 = scmp.ne.s32.totalorder %s2503_s3, %s1605_s7  ;;  %p1612_p10 = scmp.lt.u32.totalorder %s1605_s7, %s2503_s3 }
  0x2b   : > { %p1608_p2 = pnand %p1606_p1, %p1579_p13 }
  0x2d   : > { %p1609_p6 = pneg %p1608_p2 }
  0x2f   : > { %p1614_p3 = pnand %p1612_p10, %p1609_p6 }
  0x31   : > { %1617 = shalt.err (!%p1614_p3)
}
  0x32   : > { %s1618_s28 = scalar_lea.vmem %s1828_s6, 1024  ;;  %p1626_p12 = scmp.lt.s32.totalorder %s1828_s6, %s1828_s6 }
  0x33   : > { %p1619_p5 = scmp.ne.s32.totalorder %s1828_s6, %s1618_s28  ;;  %p1627_p0 = scmp.lt.s32.totalorder %s1618_s28, %s1618_s28 }
  0x35   : > { %p1621_p7 = pnand %p1619_p5, %p1579_p13  ;;  %p1628_p1 = por %p1627_p0, %p1626_p12 }
  0x37   : > { %p1622_p9 = pneg %p1621_p7 }
  0x39   : > { %p1629_p2 = pnand %p1628_p1, %p1622_p9 }
  0x3b   : > { %1632 = shalt.err (!%p1629_p2)
}
  0x3c   : > { %1404 = dma.hbm_to_vmem [thread:$0]  (!%p1824_p11), %s2503_s3, 1024, %s1828_s6, [#allocation6], %s1737_s15, %s1737_s15, %s1738_s16  }
  0x3d   : > { %s1889_s29 = sadd.s32 1, %s1733_s21   ;;  %s29_s14 = sadd.s32 1, %s1729_s20 }
  0x3e   : > { %s26_s17 = ssub.s32 %s1733_s21, %s1889_s29  ;;  %p36_p13 = scmp.ne.s32.totalorder %s1729_s20, %s1725_s19 }
  0x3f   : > { %p27_p6 = scmp.eq.s32.totalorder %s26_s17, 0  ;;  %p37_p10 = scmp.eq.s32.totalorder %s1733_s21, 0 }
  0x40   : > { %p2516_p3 = scmp.eq.s32.totalorder %s1794_s22, 1  ;;  %p1415_p7 = scmp.lt.s32.totalorder %s1733_s21, 2 }
  0x41   : > { %s1905_s27 = scalar_select %p27_p6, %s1729_s20, %s29_s14  }
  0x42   : > { %p1899_p5 = por %p2516_p3, %p36_p13  ;;  %p38_p9 = por %p37_p10, %p36_p13 }
  0x43   : > { %s208_s30 = sand.u32 1, %s1729_s20   ;;  %s1287_s6 = sshll.u32 %s1733_s21, 10 }
  0x44   : > { %s2517_s23 = scalar_select %p1899_p5, 1, 0 }
  0x45   : > { %s1249_s7 = sshll.u32 %s208_s30, 6  ;;  %s1912_s10 = scalar_lea.hbm %s2500_s0, %s1287_s6 }
  0x46   : > { %s212_s11 = scalar_lea.vmem [#allocation2], %s1249_s7  ;;  %p1916_p11 = pnand %p1415_p7, %p38_p9 }
  0x47   : > { %s219_s28 = sshll.u32 %s212_s11, 4  ;;  %s1920_s13 = scalar_lea.sflag [#allocation3], %s208_s30  ;;  %s1914_s28 = int_to_ptr.vmem [resolvable:$true] %s219_s28 }
  0x48   : > { %s1633_s14 = scalar_lea.hbm %s1912_s10, 1024  ;;  %p1635_p0 = pneg %p1916_p11 }
  0x49   : > { %p1634_p12 = scmp.ne.s32.totalorder %s1912_s10, %s1633_s14  ;;  %s1638_s6 = scalar_lea.hbm %s2500_s0, 2048 }
  0x4a   : > { %p1639_p13 = scmp.lt.u32.totalorder %s1912_s10, %s2500_s0  ;;  %p1640_p6 = scmp.lt.u32.totalorder %s1638_s6, %s1633_s14 }
  0x4b   : > { %p1636_p1 = pnand %p1635_p0, %p1634_p12  ;;  %p1642_p3 = scmp.lt.u32.totalorder %s1633_s14, %s1912_s10 }
  0x4c   : > { %p1641_p10 = por %p1640_p6, %p1639_p13 }
  0x4d   : > { %p1637_p2 = pneg %p1636_p1 }
  0x4e   : > { %p1643_p7 = por %p1642_p3, %p1641_p10 }
  0x50   : > { %p1644_p9 = pnand %p1643_p7, %p1637_p2 }
  0x52   : > { %1647 = shalt.err (!%p1644_p9)
}
  0x53   : > { %s1648_s30 = scalar_lea.vmem %s1914_s28, 1024  ;;  %s1739_s11 = smov [#allocation2]  }
  0x54   : > { %p1649_p12 = scmp.ne.s32.totalorder %s1914_s28, %s1648_s30  ;;  %s1653_s17 = sshll.u32 %s1739_s11, 4  ;;  %s1654_s17 = int_to_ptr.vmem [resolvable:$false] %s1653_s17 }
  0x55   : > { %s1655_s7 = scalar_lea.vmem %s1654_s17, 2048  ;;  %p1656_p4 = scmp.lt.s32.totalorder %s1914_s28, %s1654_s17 }
  0x56   : > { %p1651_p1 = pnand %p1649_p12, %p1635_p0  ;;  %p1657_p13 = scmp.lt.s32.totalorder %s1655_s7, %s1648_s30 }
  0x58   : > { %p1652_p5 = pneg %p1651_p1  ;;  %p1658_p6 = por %p1657_p13, %p1656_p4 }
  0x5a   : > { %p1659_p10 = pnand %p1658_p6, %p1652_p5 }
  0x5c   : > { %1662 = shalt.err (!%p1659_p10)
}
  0x5d   : > { %1408 = dma.hbm_to_vmem [thread:$0]  (!%p1916_p11), %s1912_s10, 1024, %s1914_s28, %s1920_s13, %s1737_s15, %s1737_s15, %s1738_s16  }
  0x5e   : > { %231 = sbr.rel (%p1813_p8) target bundleno = 1097 (0x449), region = 40 }
  0x65   : > { %s1954_s14 = sand.u32 1, %s1725_s19   ;;  %p2519_p4 = scmp.ne.s32.totalorder %s2512_s24, 0 }
  0x66   : > { %s1253_s6 = sshll.u32 %s1954_s14, 6  ;;  %s234_s8 = scalar_lea.sflag [#allocation3], %s1954_s14 }
  0x67   : > { %s1958_s9 = scalar_lea.vmem [#allocation2], %s1253_s6 }
  0x68   : > { %1708 = dma.done.wait (%p2519_p4), %s234_s8, 1024  }
  0x69   : > { %1710 = vsyncadd (%p2519_p4), %s234_s8, 4294966272  ;;  %p2520_p5 = scmp.eq.s32.totalorder %s1794_s22, 0 }
  0x6b   : > { %1712 = dma.done.wait (%p2520_p5), [#allocation6], 2048   ;;  %p2521_p8 = pmov %p2520_p5 }
  0x6c   : > { %v1457_v0 = vld [vmem:[#allocation5] sm:$0xff]   ;;  %v1458_v1 = vld [vmem:[#allocation5 + $0x8] sm:$0xff]   ;;  %v1459_v2 = vld [vmem:[#allocation5 + $0x10] sm:$0xff]   ;;  %s1384_s10 = smul.u32 384, %s1954_s14  ;;  %s1138_s17 = scalar_lea.sflag [#allocation4], %s1954_s14 }
  0x6d   : > { %1714 = vsyncadd (%p2521_p8), [#allocation6], 4294965248  ;;  %1320 = vmatprep.subr.bf16.mxu0 %v1457_v0  ;;  %v1460_v3 = vld [vmem:[#allocation5 + $0x18] sm:$0xff]   ;;  %v1465_v4 = vld [vmem:[%s1958_s9] sm:$0xff]   ;;  %s1385_s12 = smul.u32 6144, %s1794_s22  ;;  %p2532_p0 = scmp.ne.s32.totalorder %s2517_s23, 0 }
  0x6e   : > { %1321 = vmatpush3.bf16.msra.mxu0 %v1457_v0  ;;  %1336 = vmatprep.mubr.bf16.mxu0 %v1465_v4  ;;  %v1461_v5 = vld [vmem:[#allocation5 + $0x20] sm:$0xff]   ;;  %v1462_v6 = vld [vmem:[#allocation5 + $0x28] sm:$0xff]   ;;  %v1463_v9 = vld [vmem:[#allocation5 + $0x30] sm:$0xff]   ;;  %s2272_s28 = scalar_lea.vmem [#allocation8], %s1384_s10  ;;  %s1740_s6 = smov [#allocation8]  }
  0x6f   : > { %1322 = vmatprep.subr.bf16.mxu0 %v1458_v1  ;;  %v1473_v7 = vld [vmem:[#allocation7] sm:$0xff]   ;;  %v1474_v8 = vld [vmem:[#allocation7 + $0x8] sm:$0xff]   ;;  %v1475_v10 = vld [vmem:[#allocation7 + $0x10] sm:$0xff]   ;;  %s1152_s13 = sshll.u32 %s2272_s28, 4  ;;  %s2451_s11 = scalar_lea.hbm %s2505_s5, %s1385_s12  ;;  %s2455_s13 = int_to_ptr.vmem [resolvable:$true] %s1152_s13 }
  0x70   : > { %1352 = vmatprep.subr.bf16.mxu1 %v1473_v7  ;;  %v1464_v11 = vld [vmem:[#allocation5 + $0x38] sm:$0xff]   ;;  %v1477_v13 = vld [vmem:[#allocation7 + $0x20] sm:$0xff]   ;;  %v1466_v14 = vld [vmem:[%s1958_s9 + $0x8] sm:$0xff]   ;;  %s1663_s7 = scalar_lea.vmem %s2455_s13, 6144  ;;  %s1667_s8 = sshll.u32 %s1740_s6, 4  ;;  %s1668_s8 = int_to_ptr.vmem [resolvable:$false] %s1667_s8 }
  0x71   : > { %1353 = vmatpush3.bf16.msra.mxu1 %v1473_v7  ;;  %v1476_v12 = vld [vmem:[#allocation7 + $0x18] sm:$0xff]   ;;  %v1467_v15 = vld [vmem:[%s1958_s9 + $0x10] sm:$0xff]   ;;  %v1478_v16 = vld [vmem:[#allocation7 + $0x28] sm:$0xff]   ;;  %p1664_p11 = scmp.ne.s32.totalorder %s2455_s13, %s1663_s7  ;;  %p1670_p7 = scmp.lt.s32.totalorder %s2455_s13, %s1668_s8 }
  0x72   : > { %1323 = vmatpush3.bf16.msra.mxu0 %v1458_v1  ;;  %1354 = vmatprep.subr.bf16.mxu1 %v1474_v8  ;;  %v1468_v17 = vld [vmem:[%s1958_s9 + $0x18] sm:$0xff]   ;;  %v1469_v18 = vld [vmem:[%s1958_s9 + $0x20] sm:$0xff]   ;;  %v1470_v19 = vld [vmem:[%s1958_s9 + $0x28] sm:$0xff]  }
  0x73   : > { %1324 = vmatprep.subr.bf16.mxu0 %v1459_v2  ;;  %v1471_v20 = vld [vmem:[%s1958_s9 + $0x30] sm:$0xff]   ;;  %v1472_v21 = vld [vmem:[%s1958_s9 + $0x38] sm:$0xff]   ;;  %v1256_v24 = vld [vmem:[%s2502_s2] ss:$0 sm:$0xff]  ;;  %p1665_p2 = pnand %p1664_p11, %p2532_p0  ;;  %s1669_s9 = scalar_lea.vmem %s1668_s8, 12288 }
  0x74   : > { %v1479_v22 = vld [vmem:[#allocation7 + $0x30] sm:$0xff]   ;;  %v1480_v23 = vld [vmem:[#allocation7 + $0x38] sm:$0xff]   ;;  %p1671_p9 = scmp.lt.s32.totalorder %s1669_s9, %s1663_s7 }
  0x75   : > { %1355 = vmatpush3.bf16.msra.mxu1 %v1474_v8  ;;  %p1666_p3 = pneg %p1665_p2 }
  0x76   : > { %1325 = vmatpush3.bf16.msra.mxu0 %v1459_v2  ;;  %1356 = vmatprep.subr.bf16.mxu1 %v1475_v10  ;;  %p1672_p12 = por %p1671_p9, %p1670_p7 }
  0x77   : > { %1326 = vmatprep.subr.bf16.mxu0 %v1460_v3 }
  0x78   : > { %p1673_p1 = pnand %p1672_p12, %p1666_p3 }
  0x79   : > { %1357 = vmatpush3.bf16.msra.mxu1 %v1475_v10 }
  0x7a   : > { %1327 = vmatpush3.bf16.msra.mxu0 %v1460_v3  ;;  %1358 = vmatprep.subr.bf16.mxu1 %v1476_v12 }
  0x7b   : > { %1328 = vmatprep.subr.bf16.mxu0 %v1461_v5 }
  0x7d   : > { %1359 = vmatpush3.bf16.msra.mxu1 %v1476_v12 }
  0x7e   : > { %1329 = vmatpush3.bf16.msra.mxu0 %v1461_v5  ;;  %1360 = vmatprep.subr.bf16.mxu1 %v1477_v13 }
  0x7f   : > { %1330 = vmatprep.subr.bf16.mxu0 %v1462_v6 }
  0x81   : > { %1361 = vmatpush3.bf16.msra.mxu1 %v1477_v13 }
  0x82   : > { %1331 = vmatpush3.bf16.msra.mxu0 %v1462_v6  ;;  %1362 = vmatprep.subr.bf16.mxu1 %v1478_v16 }
  0x83   : > { %1332 = vmatprep.subr.bf16.mxu0 %v1463_v9 }
  0x85   : > { %1363 = vmatpush3.bf16.msra.mxu1 %v1478_v16 }
  0x86   : > { %1333 = vmatpush3.bf16.msra.mxu0 %v1463_v9  ;;  %1364 = vmatprep.subr.bf16.mxu1 %v1479_v22 }
  0x87   : > { %1334 = vmatprep.subr.bf16.mxu0 %v1464_v11 }
  0x89   : > { %1365 = vmatpush3.bf16.msra.mxu1 %v1479_v22 }
  0x8a   : > { %1335 = vmatpush3.bf16.msra.mxu0 %v1464_v11  ;;  %1366 = vmatprep.subr.bf16.mxu1 %v1480_v23 }
  0x8d   : > { %1337 = vmatmul.mubr.bf16.vlgmr.msra.gmra.mrb[0].mxu0 %v1466_v14  ;;  %1367 = vmatpush3.bf16.msra.mxu1 %v1480_v23 }
  0x8e   : > { %1340 = vmatprep.mubr.bf16.mxu0 %v1467_v15 }
  0x95   : > { %1341 = vmatmul.mubr.bf16.gmra.mrb[4].mxu0 %v1468_v17  ;;  %v699_v17 = vlaneseq }
  0x96   : > { %1344 = vmatprep.mubr.bf16.mxu0 %v1469_v18 }
  0x97   : > { %v1979_v18 = vand.u32 127, %v699_v17 }
  0x99   : > { %vm701_vm0 = vcmp.lt.s32.totalorder %v1979_v18, 8  ;;  %vm990_vm1 = vcmp.eq.s32.totalorder %v1979_v18, 8  ;;  %vm1039_vm2 = vcmp.eq.s32.totalorder %v1979_v18, 0  ;;  %vm1056_vm3 = vcmp.eq.s32.totalorder %v1979_v18, 1 }
  0x9d   : > { %1345 = vmatmul.mubr.bf16.gmra.mrb[8].mxu0 %v1470_v19  ;;  %v1273_v19 = vld [vmem:[%s2504_s4] ss:$0 sm:$0xff] }
  0x9e   : > { %1348 = vmatprep.mubr.bf16.mxu0 %v1471_v20 }
  0xa5   : > { %1349 = vmatmul.mubr.bf16.gmra.mrb[12].mxu0 %v1472_v21 }
 0x160   : > { %v1338_v25 = vpop.f32.mrb[0].mxu0 }
 0x161   : > { %v453_v26 = vadd.f32 %v1338_v25, %v1256_v24  ;;  %v444_v27 = vpop.f32.mrb[1].mxu0 }
 0x162   : > { %v445_v28 = vadd.f32 %v1256_v24, %v444_v27  ;;  %v1339_v29 = vpop.f32.mrb[2].mxu0 }
 0x163   : > { %v456_v30 = vadd.f32 %v1339_v29, %v1256_v24  ;;  %v447_v31 = vpop.f32.mrb[3].mxu0  ;;  %v509_v33 = vmax.f32 %v453_v26, 0.0 }
 0x164   : > { %v448_v32 = vadd.f32 %v1256_v24, %v447_v31  ;;  %v507_v35 = vmax.f32 %v445_v28, 0.0 }
 0x165   : > { %v510_v34 = vmax.f32 %v456_v30, 0.0 }
 0x166   : > { %v508_v36 = vmax.f32 %v448_v32, 0.0 }
 0x167   : > { %v540_v37 = vpack.c.bf16 %v510_v34, %v509_v33 }
 0x168   : > { %v1342_v38 = vpop.f32.mrb[4].mxu0  ;;  %v539_v39 = vpack.c.bf16 %v508_v36, %v507_v35 }
 0x169   : > { %v469_v40 = vadd.f32 %v1342_v38, %v1256_v24  ;;  %v460_v41 = vpop.f32.mrb[5].mxu0 }
 0x16a   : > { %v461_v42 = vadd.f32 %v1256_v24, %v460_v41  ;;  %v1343_v43 = vpop.f32.mrb[6].mxu0  ;;  %1368 = vmatprep.mubr.bf16.mxu1 %v539_v39 }
 0x16b   : > { %v513_v44 = vmax.f32 %v469_v40, 0.0  ;;  %v472_v45 = vadd.f32 %v1343_v43, %v1256_v24  ;;  %v463_v46 = vpop.f32.mrb[7].mxu0  ;;  %1369 = vmatmul.mubr.bf16.vlgmr.msra.gmra.mrb[0].mxu1 %v540_v37 }
 0x16c   : > { %v464_v47 = vadd.f32 %v1256_v24, %v463_v46  ;;  %v511_v49 = vmax.f32 %v461_v42, 0.0 }
 0x16d   : > { %v514_v48 = vmax.f32 %v472_v45, 0.0 }
 0x16e   : > { %v512_v50 = vmax.f32 %v464_v47, 0.0 }
 0x16f   : > { %v542_v51 = vpack.c.bf16 %v514_v48, %v513_v44 }
 0x170   : > { %v541_v52 = vpack.c.bf16 %v512_v50, %v511_v49  ;;  %v1346_v53 = vpop.f32.mrb[8].mxu0 }
 0x171   : > { %v485_v54 = vadd.f32 %v1346_v53, %v1256_v24  ;;  %v476_v55 = vpop.f32.mrb[9].mxu0 }
 0x172   : > { %v477_v56 = vadd.f32 %v1256_v24, %v476_v55  ;;  %v1347_v57 = vpop.f32.mrb[10].mxu0  ;;  %1372 = vmatprep.mubr.bf16.mxu1 %v541_v52 }
 0x173   : > { %v517_v58 = vmax.f32 %v485_v54, 0.0  ;;  %v488_v59 = vadd.f32 %v1347_v57, %v1256_v24  ;;  %v479_v60 = vpop.f32.mrb[11].mxu0  ;;  %1373 = vmatmul.mubr.bf16.gmra.mrb[4].mxu1 %v542_v51 }
 0x174   : > { %v480_v61 = vadd.f32 %v1256_v24, %v479_v60  ;;  %v515_v63 = vmax.f32 %v477_v56, 0.0 }
 0x175   : > { %v518_v62 = vmax.f32 %v488_v59, 0.0 }
 0x176   : > { %v516_v0 = vmax.f32 %v480_v61, 0.0 }
 0x177   : > { %v544_v1 = vpack.c.bf16 %v518_v62, %v517_v58 }
 0x178   : > { %v543_v2 = vpack.c.bf16 %v516_v0, %v515_v63  ;;  %v1350_v3 = vpop.f32.mrb[12].mxu0 }
 0x179   : > { %v501_v4 = vadd.f32 %v1350_v3, %v1256_v24  ;;  %v492_v5 = vpop.f32.mrb[13].mxu0 }
 0x17a   : > { %v493_v6 = vadd.f32 %v1256_v24, %v492_v5  ;;  %v1351_v7 = vpop.f32.mrb[14].mxu0  ;;  %1376 = vmatprep.mubr.bf16.mxu1 %v543_v2 }
 0x17b   : > { %v521_v8 = vmax.f32 %v501_v4, 0.0  ;;  %v504_v9 = vadd.f32 %v1351_v7, %v1256_v24  ;;  %v495_v10 = vpop.f32.mrb[15].mxu0  ;;  %1377 = vmatmul.mubr.bf16.gmra.mrb[8].mxu1 %v544_v1 }
 0x17c   : > { %v496_v11 = vadd.f32 %v1256_v24, %v495_v10  ;;  %v519_v13 = vmax.f32 %v493_v6, 0.0 }
 0x17d   : > { %v522_v12 = vmax.f32 %v504_v9, 0.0 }
 0x17e   : > { %v520_v14 = vmax.f32 %v496_v11, 0.0 }
 0x17f   : > { %v546_v15 = vpack.c.bf16 %v522_v12, %v521_v8 }
 0x180   : > { %v545_v16 = vpack.c.bf16 %v520_v14, %v519_v13 }
 0x182   : > { %1380 = vmatprep.mubr.bf16.mxu1 %v545_v16 }
 0x183   : > { %1381 = vmatmul.mubr.bf16.gmra.mrb[12].mxu1 %v546_v15 }
 0x23e   : > { %v1370_v20 = vpop.f32.mrb[0].mxu1 }
 0x23f   : > { %v1985_v21 = vadd.f32 %v1370_v20, %v1273_v19  ;;  %v636_v22 = vpop.f32.mrb[1].mxu1 }
 0x240   : > { %v1987_v23 = vadd.f32 %v1273_v19, %v636_v22  ;;  %v1371_v24 = vpop.f32.mrb[2].mxu1 }
 0x241   : > { %v1989_v25 = vadd.f32 %v1371_v24, %v1273_v19  ;;  %v639_v26 = vpop.f32.mrb[3].mxu1  ;;  %v1994_v27 = vsel %vm701_vm0, %v1985_v21, -1e+30 }
 0x242   : > { %v1996_v28 = vadd.f32 %v1273_v19, %v639_v26  ;;  %722 = vmax.xlane.f32.xlu1 %v1994_v27  ;;  %v2002_v29 = vsel %vm701_vm0, %v1987_v23, -1e+30 }
 0x243   : > { %718 = vmax.xlane.f32.xlu0 %v2002_v29  ;;  %v2008_v30 = vsel %vm701_vm0, %v1989_v25, -1e+30 }
 0x244   : > { %v2014_v32 = vsel %vm701_vm0, %v1996_v28, -1e+30 }
 0x246   : > { %724 = vmax.xlane.f32.xlu1 %v2008_v30  ;;  %v1374_v31 = vpop.f32.mrb[4].mxu1 }
 0x247   : > { %v2016_v33 = vadd.f32 %v1374_v31, %v1273_v19  ;;  %v652_v34 = vpop.f32.mrb[5].mxu1  ;;  %720 = vmax.xlane.f32.xlu0 %v2014_v32 }
 0x248   : > { %v1375_v35 = vpop.f32.mrb[6].mxu1  ;;  %v2026_v39 = vadd.f32 %v1273_v19, %v652_v34 }
 0x249   : > { %v2019_v36 = vadd.f32 %v1375_v35, %v1273_v19  ;;  %v655_v37 = vpop.f32.mrb[7].mxu1  ;;  %v2024_v38 = vsel %vm701_vm0, %v2016_v33, -1e+30 }
 0x24a   : > { %v2028_v40 = vadd.f32 %v1273_v19, %v655_v37  ;;  %v2040_v43 = vsel %vm701_vm0, %v2026_v39, -1e+30 }
 0x24b   : > { %730 = vmax.xlane.f32.xlu0 %v2024_v38  ;;  %v2034_v41 = vsel %vm701_vm0, %v2019_v36, -1e+30 }
 0x24c   : > { %732 = vmax.xlane.f32.xlu1 %v2034_v41  ;;  %v2048_v46 = vsel %vm701_vm0, %v2028_v40, -1e+30 }
 0x24e   : > { %v1378_v42 = vpop.f32.mrb[8].mxu1 }
 0x24f   : > { %v2042_v44 = vadd.f32 %v1378_v42, %v1273_v19  ;;  %v668_v45 = vpop.f32.mrb[9].mxu1  ;;  %726 = vmax.xlane.f32.xlu0 %v2040_v43 }
 0x250   : > { %v1379_v47 = vpop.f32.mrb[10].mxu1  ;;  %728 = vmax.xlane.f32.xlu1 %v2048_v46  ;;  %v2058_v51 = vadd.f32 %v1273_v19, %v668_v45 }
 0x251   : > { %v2051_v48 = vadd.f32 %v1379_v47, %v1273_v19  ;;  %v671_v49 = vpop.f32.mrb[11].mxu1  ;;  %v2056_v50 = vsel %vm701_vm0, %v2042_v44, -1e+30 }
 0x252   : > { %v2060_v52 = vadd.f32 %v1273_v19, %v671_v49  ;;  %v2072_v55 = vsel %vm701_vm0, %v2058_v51, -1e+30 }
 0x253   : > { %738 = vmax.xlane.f32.xlu0 %v2056_v50  ;;  %v2066_v53 = vsel %vm701_vm0, %v2051_v48, -1e+30 }
 0x254   : > { %740 = vmax.xlane.f32.xlu1 %v2066_v53  ;;  %v2078_v58 = vsel %vm701_vm0, %v2060_v52, -1e+30 }
 0x256   : > { %v1382_v54 = vpop.f32.mrb[12].mxu1 }
 0x257   : > { %v693_v56 = vadd.f32 %v1382_v54, %v1273_v19  ;;  %v684_v57 = vpop.f32.mrb[13].mxu1  ;;  %734 = vmax.xlane.f32.xlu0 %v2072_v55 }
 0x258   : > { %v2080_v59 = vadd.f32 %v1273_v19, %v684_v57  ;;  %v1383_v60 = vpop.f32.mrb[14].mxu1  ;;  %736 = vmax.xlane.f32.xlu1 %v2078_v58 }
 0x259   : > { %v696_v61 = vadd.f32 %v1383_v60, %v1273_v19  ;;  %v687_v62 = vpop.f32.mrb[15].mxu1  ;;  %v2086_v63 = vsel %vm990_vm1, %v693_v56, 0.0  ;;  %v2108_v4 = vsel %vm701_vm0, %v693_v56, -1e+30 }
 0x25a   : > { %2522 = vst [vmem:[#allocation12_spill] sm:$0xff] %v2086_v63  ;;  %v2088_v0 = vadd.f32 %v1273_v19, %v687_v62  ;;  %v2093_v1 = vsel %vm701_vm0, %v2080_v59, -1e+30  ;;  %2524 = vst [vmem:[#allocation14_spill] sm:$0xff] %v2108_v4 }
 0x25b   : > { %742 = vmax.xlane.f32.xlu0 %v2093_v1  ;;  %v2098_v2 = vsel %vm990_vm1, %v696_v61, 0.0  ;;  %v2113_v5 = vsel %vm701_vm0, %v696_v61, -1e+30 }
 0x25c   : > { %2523 = vst [vmem:[#allocation13_spill] sm:$0xff] %v2098_v2  ;;  %v2103_v3 = vsel %vm701_vm0, %v2088_v0, -1e+30  ;;  %2525 = vst [vmem:[#allocation15_spill] sm:$0xff] %v2113_v5 }
 0x25d   : > { %744 = vmax.xlane.f32.xlu1 %v2103_v3 }
 0x25f   : > { %746 = vmax.xlane.f32.xlu0 %v2108_v4 }
 0x261   : > { %748 = vmax.xlane.f32.xlu1 %v2113_v5 }
 0x2cf   : > { %v2116_v6 = vpop.xlane.xlu1 %722 }
 0x2d0   : > { %v752_v7 = vsub.f32 %v1994_v27, %v2116_v6  ;;  %v2120_v8 = vpop.xlane.xlu0 %718 }
 0x2d1   : > { %v750_v9 = vsub.f32 %v2002_v29, %v2120_v8 }
 0x2d2   : > { %v770_v10 = vmul.f32 1.442695, %v752_v7 }
 0x2d3   : > { %v766_v11 = vmul.f32 1.442695, %v750_v9  ;;  %v2124_v12 = vpop.xlane.xlu1 %724 }
 0x2d4   : > { %1481 = vpow2.f32 %v770_v10  ;;  %v753_v13 = vsub.f32 %v2008_v30, %v2124_v12  ;;  %v2128_v14 = vpop.xlane.xlu0 %720 }
 0x2d5   : > { %v751_v15 = vsub.f32 %v2014_v32, %v2128_v14  ;;  %1483 = vpow2.f32 %v766_v11 }
 0x2d6   : > { %v772_v16 = vmul.f32 1.442695, %v753_v13 }
 0x2d7   : > { %v768_v17 = vmul.f32 1.442695, %v751_v15 }
 0x2d8   : > { %1485 = vpow2.f32 %v772_v16  ;;  %v2132_v19 = vpop.xlane.xlu0 %730 }
 0x2d9   : > { %v756_v20 = vsub.f32 %v2024_v38, %v2132_v19  ;;  %v2136_v22 = vpop.xlane.xlu1 %732  ;;  %1487 = vpow2.f32 %v768_v17 }
 0x2da   : > { %v757_v24 = vsub.f32 %v2034_v41, %v2136_v22 }
 0x2db   : > { %v778_v26 = vmul.f32 1.442695, %v756_v20 }
 0x2dc   : > { %v780_v31 = vmul.f32 1.442695, %v757_v24  ;;  %v2140_v34 = vpop.xlane.xlu0 %726 }
 0x2dd   : > { %1489 = vpow2.f32 %v778_v26  ;;  %v754_v35 = vsub.f32 %v2040_v43, %v2140_v34  ;;  %v2144_v37 = vpop.xlane.xlu1 %728 }
 0x2de   : > { %v2146_v42 = vpop.eup %1481  ;;  %v755_v45 = vsub.f32 %v2048_v46, %v2144_v37  ;;  %1491 = vpow2.f32 %v780_v31 }
 0x2df   : > { %v774_v47 = vmul.f32 1.442695, %v754_v35  ;;  %802 = vadd.xlane.f32.xlu0 %v2146_v42  ;;  %v2153_v56 = vpop.eup %1483 }
 0x2e0   : > { %v776_v49 = vmul.f32 1.442695, %v755_v45  ;;  %v2151_v54 = vpop.xlane.xlu0 %738 }
 0x2e1   : > { %1493 = vpow2.f32 %v774_v47  ;;  %v760_v57 = vsub.f32 %v2056_v50, %v2151_v54  ;;  %v2157_v60 = vpop.xlane.xlu1 %740 }
 0x2e2   : > { %v2159_v61 = vpop.eup %1485  ;;  %v761_v62 = vsub.f32 %v2066_v53, %v2157_v60  ;;  %1495 = vpow2.f32 %v776_v49 }
 0x2e3   : > { %v786_v7 = vmul.f32 1.442695, %v760_v57  ;;  %804 = vadd.xlane.f32.xlu1 %v2159_v61  ;;  %798 = vadd.xlane.f32.xlu0 %v2153_v56  ;;  %v2171_v15 = vpop.eup %1487 }
 0x2e4   : > { %v788_v9 = vmul.f32 1.442695, %v761_v62  ;;  %v2165_v10 = vpop.xlane.xlu0 %734 }
 0x2e5   : > { %1497 = vpow2.f32 %v786_v7  ;;  %v758_v11 = vsub.f32 %v2072_v55, %v2165_v10  ;;  %v2169_v13 = vpop.xlane.xlu1 %736 }
 0x2e6   : > { %v759_v16 = vsub.f32 %v2078_v58, %v2169_v13  ;;  %1499 = vpow2.f32 %v788_v9 }
 0x2e7   : > { %v2175_v17 = vpop.eup %1489  ;;  %v782_v20 = vmul.f32 1.442695, %v758_v11  ;;  %800 = vadd.xlane.f32.xlu1 %v2171_v15 }
 0x2e8   : > { %v784_v24 = vmul.f32 1.442695, %v759_v16  ;;  %810 = vadd.xlane.f32.xlu0 %v2175_v17  ;;  %v2179_v26 = vpop.xlane.xlu0 %742  ;;  %v2183_v35 = vpop.eup %1491 }
 0x2e9   : > { %1501 = vpow2.f32 %v782_v20  ;;  %v762_v31 = vsub.f32 %v2093_v1, %v2179_v26 }
 0x2ea   : > { %v2185_v45 = vpop.xlane.xlu1 %744  ;;  %1503 = vpow2.f32 %v784_v24 }
 0x2eb   : > { %v2187_v47 = vpop.eup %1493  ;;  %v790_v49 = vmul.f32 1.442695, %v762_v31  ;;  %v763_v57 = vsub.f32 %v2103_v3, %v2185_v45  ;;  %812 = vadd.xlane.f32.xlu1 %v2183_v35 }
 0x2ec   : > { %806 = vadd.xlane.f32.xlu0 %v2187_v47  ;;  %v2193_v62 = vpop.xlane.xlu0 %746  ;;  %v2197_v11 = vpop.eup %1495 }
 0x2ed   : > { %1505 = vpow2.f32 %v790_v49  ;;  %v792_v7 = vmul.f32 1.442695, %v763_v57  ;;  %v764_v9 = vsub.f32 %v2108_v4, %v2193_v62  ;;  %v994_v4 = vsel %vm990_vm1, %v1989_v25, 0.0 }
 0x2ee   : > { %v2199_v16 = vpop.xlane.xlu1 %748  ;;  %v998_v25 = vsel %vm990_vm1, %v2019_v36, 0.0  ;;  %v1002_v36 = vsel %vm990_vm1, %v2051_v48, 0.0 }
 0x2ef   : > { %2526 = vst [vmem:[#allocation16_spill] sm:$0xff] %v2199_v16  ;;  %v2201_v20 = vpop.eup %1497  ;;  %1507 = vpow2.f32 %v792_v7  ;;  %v794_v31 = vmul.f32 1.442695, %v764_v9  ;;  %v765_v24 = vsub.f32 %v2113_v5, %v2199_v16  ;;  %808 = vadd.xlane.f32.xlu1 %v2197_v11  ;;  %v992_v5 = vsel %vm990_vm1, %v1996_v28, 0.0 }
 0x2f0   : > { %818 = vadd.xlane.f32.xlu0 %v2201_v20  ;;  %v2207_v57 = vpop.eup %1499  ;;  %v993_v16 = vsel %vm990_vm1, %v1985_v21, 0.0  ;;  %v996_v28 = vsel %vm990_vm1, %v2028_v40, 0.0  ;;  %v997_v21 = vsel %vm990_vm1, %v2016_v33, 0.0  ;;  %v1000_v40 = vsel %vm990_vm1, %v2060_v52, 0.0 }
 0x2f1   : > { %1509 = vpow2.f32 %v794_v31  ;;  %v796_v49 = vmul.f32 1.442695, %v765_v24  ;;  %v1001_v33 = vsel %vm990_vm1, %v2042_v44, 0.0  ;;  %v1004_v52 = vsel %vm990_vm1, %v2088_v0, 0.0 }
 0x2f3   : > { %v2209_v2 = vpop.eup %1501  ;;  %1511 = vpow2.f32 %v796_v49  ;;  %820 = vadd.xlane.f32.xlu1 %v2207_v57  ;;  %v991_v49 = vsel %vm990_vm1, %v1987_v23, 0.0  ;;  %v995_v23 = vsel %vm990_vm1, %v2026_v39, 0.0  ;;  %v999_v39 = vsel %vm990_vm1, %v2058_v51, 0.0 }
 0x2f4   : > { %814 = vadd.xlane.f32.xlu0 %v2209_v2  ;;  %v2213_v7 = vpop.eup %1503  ;;  %v1003_v51 = vsel %vm990_vm1, %v2080_v59, 0.0 }
 0x2f7   : > { %v2215_v9 = vpop.eup %1505  ;;  %816 = vadd.xlane.f32.xlu1 %v2213_v7 }
 0x2f8   : > { %822 = vadd.xlane.f32.xlu0 %v2215_v9 }
 0x2f9   : > { %v2219_v63 = vpop.eup %1507 }
 0x2fb   : > { %v2221_v31 = vpop.eup %1509  ;;  %824 = vadd.xlane.f32.xlu1 %v2219_v63 }
 0x2fc   : > { %826 = vadd.xlane.f32.xlu0 %v2221_v31 }
 0x2fd   : > { %v2225_v24 = vpop.eup %1511 }
 0x2ff   : > { %828 = vadd.xlane.f32.xlu1 %v2225_v24 }
 0x300   : > { %1007 = vadd.xlane.f32.xlu0 %v991_v49 }
 0x303   : > { %1009 = vadd.xlane.f32.xlu1 %v992_v5 }
 0x304   : > { %1011 = vadd.xlane.f32.xlu0 %v993_v16 }
 0x307   : > { %1013 = vadd.xlane.f32.xlu1 %v994_v4 }
 0x308   : > { %1015 = vadd.xlane.f32.xlu0 %v995_v23 }
 0x30b   : > { %1017 = vadd.xlane.f32.xlu1 %v996_v28 }
 0x30c   : > { %1019 = vadd.xlane.f32.xlu0 %v997_v21 }
 0x30f   : > { %1021 = vadd.xlane.f32.xlu1 %v998_v25 }
 0x310   : > { %1023 = vadd.xlane.f32.xlu0 %v999_v39 }
 0x313   : > { %1025 = vadd.xlane.f32.xlu1 %v1000_v40 }
 0x314   : > { %1027 = vadd.xlane.f32.xlu0 %v1001_v33 }
 0x317   : > { %1029 = vadd.xlane.f32.xlu1 %v1002_v36 }
 0x318   : > { %1031 = vadd.xlane.f32.xlu0 %v1003_v51 }
 0x31b   : > { %1033 = vadd.xlane.f32.xlu1 %v1004_v52 }
 0x36c   : > { %v803_v4 = vpop.xlane.xlu0 %802 }
 0x36d   : > { %1513 = vrcp.f32 %v803_v4 }
 0x36e   : > { %1515 = vlog2.f32 %v803_v4 }
 0x370   : > { %v805_v44 = vpop.xlane.xlu1 %804  ;;  %v799_v5 = vpop.xlane.xlu0 %798 }
 0x371   : > { %1517 = vrcp.f32 %v805_v44 }
 0x372   : > { %1519 = vlog2.f32 %v805_v44 }
 0x373   : > { %1521 = vrcp.f32 %v799_v5 }
 0x374   : > { %1523 = vlog2.f32 %v799_v5  ;;  %v801_v48 = vpop.xlane.xlu1 %800 }
 0x375   : > { %1525 = vrcp.f32 %v801_v48  ;;  %v811_v16 = vpop.xlane.xlu0 %810 }
 0x376   : > { %1527 = vlog2.f32 %v801_v48 }
 0x377   : > { %v1514_v59 = vpop.eup %1513  ;;  %1529 = vrcp.f32 %v811_v16 }
 0x378   : > { %v1516_v49 = vpop.eup %1515  ;;  %1531 = vlog2.f32 %v811_v16  ;;  %v813_v0 = vpop.xlane.xlu1 %812  ;;  %v835_v23 = vmul.f32 %v1514_v59, %v2146_v42 }
 0x379   : > { %v867_v28 = vmul.f32 0.6931472, %v1516_v49  ;;  %1533 = vrcp.f32 %v813_v0  ;;  %v807_v21 = vpop.xlane.xlu0 %806 }
 0x37a   : > { %1535 = vlog2.f32 %v813_v0  ;;  %1091 = vst [vmem:[%s2272_s28 + $0x30] sm:$0xff] %v835_v23 }
 0x37b   : > { %v1518_v25 = vpop.eup %1517  ;;  %1537 = vrcp.f32 %v807_v21  ;;  %v896_v39 = vadd.f32 %v867_v28, %v2116_v6 }
 0x37c   : > { %v1520_v40 = vpop.eup %1519  ;;  %1539 = vlog2.f32 %v807_v21  ;;  %v809_v33 = vpop.xlane.xlu1 %808  ;;  %v837_v36 = vmul.f32 %v1518_v25, %v2159_v61 }
 0x37d   : > { %v1522_v42 = vpop.eup %1521  ;;  %v869_v51 = vmul.f32 0.6931472, %v1520_v40  ;;  %1541 = vrcp.f32 %v809_v33  ;;  %v819_v52 = vpop.xlane.xlu0 %818  ;;  %v912_v4 = vsub.f32 %v1994_v27, %v896_v39 }
 0x37e   : > { %v1524_v44 = vpop.eup %1523  ;;  %1543 = vlog2.f32 %v809_v33  ;;  %1092 = vst [vmem:[%s2272_s28 + $0x48] sm:$0xff] %v837_v36  ;;  %v831_v5 = vmul.f32 %v1522_v42, %v2153_v56 }
 0x37f   : > { %v1526_v48 = vpop.eup %1525  ;;  %v863_v6 = vmul.f32 0.6931472, %v1524_v44  ;;  %1545 = vrcp.f32 %v819_v52  ;;  %v928_v16 = vmul.f32 %v912_v4, %v835_v23  ;;  %1107 = vst [vmem:[%s2272_s28 + $0x38] sm:$0xff] %v912_v4  ;;  %v897_v61 = vadd.f32 %v869_v51, %v2124_v12 }
 0x380   : > { %v1528_v59 = vpop.eup %1527  ;;  %1547 = vlog2.f32 %v819_v52  ;;  %v821_v49 = vpop.xlane.xlu1 %820  ;;  %1089 = vst [vmem:[%s2272_s28] sm:$0xff] %v831_v5  ;;  %v833_v0 = vmul.f32 %v1526_v48, %v2171_v15 }
 0x381   : > { %v1530_v27 = vpop.eup %1529  ;;  %v865_v28 = vmul.f32 0.6931472, %v1528_v59  ;;  %1549 = vrcp.f32 %v821_v49  ;;  %946 = vadd.xlane.f32.xlu0 %v928_v16  ;;  %v815_v56 = vpop.xlane.xlu0 %814  ;;  %v913_v21 = vsub.f32 %v2008_v30, %v897_v61  ;;  %v894_v23 = vadd.f32 %v863_v6, %v2120_v8 }
 0x382   : > { %v1532_v25 = vpop.eup %1531  ;;  %1551 = vlog2.f32 %v821_v49  ;;  %1090 = vst [vmem:[%s2272_s28 + $0x18] sm:$0xff] %v833_v0  ;;  %v843_v12 = vmul.f32 %v1530_v27, %v2175_v17 }
 0x383   : > { %v1534_v39 = vpop.eup %1533  ;;  %v875_v40 = vmul.f32 0.6931472, %v1532_v25  ;;  %1553 = vrcp.f32 %v815_v56  ;;  %v929_v15 = vmul.f32 %v913_v21, %v837_v36  ;;  %1108 = vst [vmem:[%s2272_s28 + $0x50] sm:$0xff] %v913_v21  ;;  %v910_v33 = vsub.f32 %v2002_v29, %v894_v23 }
 0x384   : > { %v1536_v42 = vpop.eup %1535  ;;  %1555 = vlog2.f32 %v815_v56  ;;  %v817_v30 = vpop.xlane.xlu1 %816  ;;  %v895_v51 = vadd.f32 %v865_v28, %v2128_v14  ;;  %1095 = vst [vmem:[%s2272_s28 + $0x90] sm:$0xff] %v843_v12  ;;  %v845_v8 = vmul.f32 %v1534_v39, %v2183_v35 }
 0x385   : > { %v1538_v52 = vpop.eup %1537  ;;  %v877_v4 = vmul.f32 0.6931472, %v1536_v42  ;;  %948 = vadd.xlane.f32.xlu1 %v929_v15  ;;  %1557 = vrcp.f32 %v817_v30  ;;  %v926_v17 = vmul.f32 %v910_v33, %v831_v5  ;;  %1105 = vst [vmem:[%s2272_s28 + $0x8] sm:$0xff] %v910_v33  ;;  %v823_v44 = vpop.xlane.xlu0 %822  ;;  %v900_v36 = vadd.f32 %v875_v40, %v2132_v19 }
 0x386   : > { %v1540_v29 = vpop.eup %1539  ;;  %1559 = vlog2.f32 %v817_v30  ;;  %v911_v48 = vsub.f32 %v2014_v32, %v895_v51  ;;  %1096 = vst [vmem:[%s2272_s28 + $0xa8] sm:$0xff] %v845_v8  ;;  %v839_v14 = vmul.f32 %v1538_v52, %v2187_v47 }
 0x387   : > { %v1542_v6 = vpop.eup %1541  ;;  %v871_v35 = vmul.f32 0.6931472, %v1540_v29  ;;  %942 = vadd.xlane.f32.xlu0 %v926_v17  ;;  %1561 = vrcp.f32 %v823_v44  ;;  %v916_v5 = vsub.f32 %v2024_v38, %v900_v36  ;;  %v901_v16 = vadd.f32 %v877_v4, %v2136_v22 }
 0x388   : > { %v1544_v61 = vpop.eup %1543  ;;  %1563 = vlog2.f32 %v823_v44  ;;  %v927_v19 = vmul.f32 %v911_v48, %v833_v0  ;;  %1106 = vst [vmem:[%s2272_s28 + $0x20] sm:$0xff] %v911_v48  ;;  %v825_v59 = vpop.xlane.xlu1 %824  ;;  %1093 = vst [vmem:[%s2272_s28 + $0x60] sm:$0xff] %v839_v14  ;;  %v841_v32 = vmul.f32 %v1542_v6, %v2197_v11 }
 0x389   : > { %v1546_v49 = vpop.eup %1545  ;;  %v873_v47 = vmul.f32 0.6931472, %v1544_v61  ;;  %1565 = vrcp.f32 %v825_v59  ;;  %v932_v27 = vmul.f32 %v916_v5, %v843_v12  ;;  %1111 = vst [vmem:[%s2272_s28 + $0x98] sm:$0xff] %v916_v5  ;;  %v827_v28 = vpop.xlane.xlu0 %826  ;;  %v917_v38 = vsub.f32 %v2034_v41, %v901_v16 }
 0x38a   : > { %v1548_v56 = vpop.eup %1547  ;;  %944 = vadd.xlane.f32.xlu1 %v927_v19  ;;  %1567 = vlog2.f32 %v825_v59  ;;  %v898_v22 = vadd.f32 %v871_v35, %v2140_v34  ;;  %1094 = vst [vmem:[%s2272_s28 + $0x78] sm:$0xff] %v841_v32  ;;  %v851_v0 = vmul.f32 %v1546_v49, %v2201_v20 }
 0x38b   : > { %v1550_v21 = vpop.eup %1549  ;;  %v883_v11 = vmul.f32 0.6931472, %v1548_v56  ;;  %954 = vadd.xlane.f32.xlu0 %v932_v27  ;;  %1569 = vrcp.f32 %v827_v28  ;;  %v933_v23 = vmul.f32 %v917_v38, %v845_v8  ;;  %1112 = vst [vmem:[%s2272_s28 + $0xb0] sm:$0xff] %v917_v38  ;;  %v899_v25 = vadd.f32 %v873_v47, %v2144_v37 }
 0x38c   : > { %v1552_v12 = vpop.eup %1551  ;;  %1571 = vlog2.f32 %v827_v28  ;;  %v829_v41 = vpop.xlane.xlu1 %828  ;;  %v914_v39 = vsub.f32 %v2040_v43, %v898_v22  ;;  %1099 = vst [vmem:[%s2272_s28 + $0xf0] sm:$0xff] %v851_v0  ;;  %v853_v34 = vmul.f32 %v1550_v21, %v2207_v57  ;;  %v2527_v28 = vld [vmem:[#allocation14_spill] sm:$0xff]  ;;  %v2529_v22 = vld [vmem:[#allocation15_spill] sm:$0xff] }
 0x38d   : > { %v1554_v20 = vpop.eup %1553  ;;  %v885_v40 = vmul.f32 0.6931472, %v1552_v12  ;;  %1573 = vrcp.f32 %v829_v41  ;;  %v915_v15 = vsub.f32 %v2048_v46, %v899_v25  ;;  %v904_v33 = vadd.f32 %v883_v11, %v2151_v54  ;;  %v2530_v11 = vld [vmem:[#allocation12_spill] sm:$0xff] }
 0x38e   : > { %v1556_v37 = vpop.eup %1555  ;;  %956 = vadd.xlane.f32.xlu1 %v933_v23  ;;  %1575 = vlog2.f32 %v829_v41  ;;  %v930_v42 = vmul.f32 %v914_v39, %v839_v14  ;;  %1109 = vst [vmem:[%s2272_s28 + $0x68] sm:$0xff] %v914_v39  ;;  %1100 = vst [vmem:[%s2272_s28 + $0x108] sm:$0xff] %v853_v34  ;;  %v847_v43 = vmul.f32 %v1554_v20, %v2209_v2  ;;  %v1008_v23 = vpop.xlane.xlu0 %1007 }
 0x38f   : > { %v1558_v30 = vpop.eup %1557  ;;  %v879_v57 = vmul.f32 0.6931472, %v1556_v37  ;;  %v931_v51 = vmul.f32 %v915_v15, %v841_v32  ;;  %1110 = vst [vmem:[%s2272_s28 + $0x80] sm:$0xff] %v915_v15  ;;  %v920_v8 = vsub.f32 %v2056_v50, %v904_v33  ;;  %v905_v46 = vadd.f32 %v885_v40, %v2157_v60 }
 0x390   : > { %v1560_v54 = vpop.eup %1559  ;;  %950 = vadd.xlane.f32.xlu0 %v930_v42  ;;  %1097 = vst [vmem:[%s2272_s28 + $0xc0] sm:$0xff] %v847_v43  ;;  %v849_v52 = vmul.f32 %v1558_v30, %v2213_v7  ;;  %v1010_v25 = vpop.xlane.xlu1 %1009 }
 0x391   : > { %v1562_v4 = vpop.eup %1561  ;;  %v881_v17 = vmul.f32 0.6931472, %v1560_v54  ;;  %v936_v44 = vmul.f32 %v920_v8, %v851_v0  ;;  %1115 = vst [vmem:[%s2272_s28 + $0xf8] sm:$0xff] %v920_v8  ;;  %v921_v2 = vsub.f32 %v2066_v53, %v905_v46  ;;  %v902_v29 = vadd.f32 %v879_v57, %v2165_v10 }
 0x392   : > { %v1564_v36 = vpop.eup %1563  ;;  %952 = vadd.xlane.f32.xlu1 %v931_v51  ;;  %1098 = vst [vmem:[%s2272_s28 + $0xd8] sm:$0xff] %v849_v52  ;;  %v855_v50 = vmul.f32 %v1562_v4, %v2215_v9  ;;  %v1012_v12 = vpop.xlane.xlu0 %1011 }
 0x393   : > { %v1566_v60 = vpop.eup %1565  ;;  %v887_v48 = vmul.f32 0.6931472, %v1564_v36  ;;  %v937_v14 = vmul.f32 %v921_v2, %v853_v34  ;;  %1116 = vst [vmem:[%s2272_s28 + $0x110] sm:$0xff] %v921_v2  ;;  %v903_v7 = vadd.f32 %v881_v17, %v2169_v13  ;;  %v918_v35 = vsub.f32 %v2072_v55, %v902_v29 }
 0x394   : > { %v1568_v6 = vpop.eup %1567  ;;  %962 = vadd.xlane.f32.xlu0 %v936_v44  ;;  %1101 = vst [vmem:[%s2272_s28 + $0x120] sm:$0xff] %v855_v50  ;;  %v857_v53 = vmul.f32 %v1566_v60, %v2219_v63  ;;  %v1014_v41 = vpop.xlane.xlu1 %1013  ;;  %v1059_v8 = vsel %vm1056_vm3, %v1012_v12, 0.0 }
 0x395   : > { %v1570_v10 = vpop.eup %1569  ;;  %v889_v5 = vmul.f32 0.6931472, %v1568_v6  ;;  %v919_v9 = vsub.f32 %v2078_v58, %v903_v7  ;;  %v906_v16 = vadd.f32 %v887_v48, %v2179_v26  ;;  %v934_v19 = vmul.f32 %v918_v35, %v847_v43  ;;  %1113 = vst [vmem:[%s2272_s28 + $0xc8] sm:$0xff] %v918_v35 }
 0x396   : > { %v1572_v61 = vpop.eup %1571  ;;  %964 = vadd.xlane.f32.xlu1 %v937_v14  ;;  %v859_v13 = vmul.f32 %v1570_v10, %v2221_v31  ;;  %1102 = vst [vmem:[%s2272_s28 + $0x138] sm:$0xff] %v857_v53  ;;  %v1016_v39 = vpop.xlane.xlu0 %1015  ;;  %v1060_v44 = vsel %vm1056_vm3, %v1014_v41, 0.0 }
 0x397   : > { %v1574_v55 = vpop.eup %1573  ;;  %v891_v59 = vmul.f32 0.6931472, %v1572_v61  ;;  %v935_v32 = vmul.f32 %v919_v9, %v849_v52  ;;  %1114 = vst [vmem:[%s2272_s28 + $0xe0] sm:$0xff] %v919_v9  ;;  %v922_v63 = vsub.f32 %v2093_v1, %v906_v16  ;;  %v907_v58 = vadd.f32 %v889_v5, %v2185_v45  ;;  %v2528_v1 = vld [vmem:[#allocation16_spill] sm:$0xff] }
 0x398   : > { %v1576_v26 = vpop.eup %1575  ;;  %958 = vadd.xlane.f32.xlu0 %v934_v19  ;;  %1103 = vst [vmem:[%s2272_s28 + $0x150] sm:$0xff] %v859_v13  ;;  %v861_v49 = vmul.f32 %v1574_v55, %v2225_v24  ;;  %v1018_v34 = vpop.xlane.xlu1 %1017 }
 0x399   : > { %v893_v47 = vmul.f32 0.6931472, %v1576_v26  ;;  %v908_v31 = vadd.f32 %v891_v59, %v2193_v62  ;;  %1117 = vst [vmem:[%s2272_s28 + $0x128] sm:$0xff] %v922_v63  ;;  %v923_v27 = vsub.f32 %v2103_v3, %v907_v58  ;;  %v938_v24 = vmul.f32 %v922_v63, %v855_v50  ;;  %v2531_v3 = vld [vmem:[#allocation13_spill] sm:$0xff] }
 0x39a   : > { %960 = vadd.xlane.f32.xlu1 %v935_v32  ;;  %1104 = vst [vmem:[%s2272_s28 + $0x168] sm:$0xff] %v861_v49  ;;  %v1020_v20 = vpop.xlane.xlu0 %1019  ;;  %v1057_v50 = vsel %vm1056_vm3, %v1008_v23, 0.0 }
 0x39b   : > { %v924_v38 = vsub.f32 %v2527_v28, %v908_v31  ;;  %v909_v56 = vadd.f32 %v893_v47, %v2528_v1  ;;  %1118 = vst [vmem:[%s2272_s28 + $0x140] sm:$0xff] %v923_v27  ;;  %v939_v62 = vmul.f32 %v923_v27, %v857_v53  ;;  %v1058_v53 = vsel %vm1056_vm3, %v1010_v25, 0.0 }
 0x39c   : > { %v1022_v40 = vpop.xlane.xlu1 %1021  ;;  %v1063_v5 = vsel %vm1056_vm3, %v1020_v20, 0.0 }
 0x39d   : > { %v940_v45 = vmul.f32 %v924_v38, %v859_v13  ;;  %1119 = vst [vmem:[%s2272_s28 + $0x158] sm:$0xff] %v924_v38  ;;  %v925_v0 = vsub.f32 %v2529_v22, %v909_v56  ;;  %v1064_v59 = vsel %vm1056_vm3, %v1022_v40, 0.0  ;;  %v1062_v38 = vsel %vm1056_vm3, %v1018_v34, 0.0 }
 0x39e   : > { %v2355_v15 = vpop.xlane.xlu0 %1023 }
 0x39f   : > { %970 = vadd.xlane.f32.xlu0 %v940_v45  ;;  %v941_v21 = vmul.f32 %v925_v0, %v861_v49  ;;  %1120 = vst [vmem:[%s2272_s28 + $0x170] sm:$0xff] %v925_v0  ;;  %v1061_v49 = vsel %vm1056_vm3, %v1016_v39, 0.0  ;;  %v1065_v39 = vsel %vm1056_vm3, %v2355_v15, 0.0 }
 0x3a0   : > { %v2357_v33 = vpop.xlane.xlu1 %1025 }
 0x3a1   : > { %972 = vadd.xlane.f32.xlu1 %v941_v21 }
 0x3a2   : > { %v1028_v37 = vpop.xlane.xlu0 %1027 }
 0x3a3   : > { %966 = vadd.xlane.f32.xlu0 %v938_v24  ;;  %v1067_v0 = vsel %vm1056_vm3, %v1028_v37, 0.0  ;;  %v1066_v37 = vsel %vm1056_vm3, %v2357_v33, 0.0 }
 0x3a4   : > { %v1030_v42 = vpop.xlane.xlu1 %1029 }
 0x3a5   : > { %968 = vadd.xlane.f32.xlu1 %v939_v62 }
 0x3a6   : > { %v2359_v43 = vpop.xlane.xlu0 %1031 }
 0x3a7   : > { %1035 = vadd.xlane.f32.xlu0 %v2530_v11 }
 0x3a8   : > { %v2361_v30 = vpop.xlane.xlu1 %1033 }
 0x3a9   : > { %1037 = vadd.xlane.f32.xlu1 %v2531_v3  ;;  %v1068_v3 = vsel %vm1056_vm3, %v1030_v42, 0.0 }
 0x40e   : > { %v947_v57 = vpop.xlane.xlu0 %946 }
 0x40f   : > { %v976_v51 = vsub.f32 0.0, %v947_v57 }
 0x411   : > { %v1042_v46 = vsel %vm1039_vm2, %v976_v51, 0.0 }
 0x412   : > { %v1075_v54 = vadd.f32 %v1059_v8, %v1042_v46  ;;  %v949_v52 = vpop.xlane.xlu1 %948 }
 0x413   : > { %v977_v4 = vsub.f32 0.0, %v949_v52 }
 0x414   : > { %1123 = vst [vmem:[%s2272_s28 + $0x40] sm:$0xff] %v1075_v54  ;;  %v943_v17 = vpop.xlane.xlu0 %942 }
 0x415   : > { %v1043_v2 = vsel %vm1039_vm2, %v977_v4, 0.0  ;;  %v974_v36 = vsub.f32 0.0, %v943_v17  ;;  %v1069_v4 = vsel %vm1056_vm3, %v2359_v43, 0.0 }
 0x416   : > { %v1076_v29 = vadd.f32 %v1060_v44, %v1043_v2 }
 0x417   : > { %v1040_v60 = vsel %vm1039_vm2, %v974_v36, 0.0  ;;  %v945_v48 = vpop.xlane.xlu1 %944 }
 0x418   : > { %1124 = vst [vmem:[%s2272_s28 + $0x58] sm:$0xff] %v1076_v29  ;;  %v1073_v14 = vadd.f32 %v1057_v50, %v1040_v60  ;;  %v975_v7 = vsub.f32 0.0, %v945_v48  ;;  %v955_v6 = vpop.xlane.xlu0 %954  ;;  %v1070_v29 = vsel %vm1056_vm3, %v2361_v30, 0.0 }
 0x419   : > { %v980_v35 = vsub.f32 0.0, %v955_v6 }
 0x41a   : > { %1121 = vst [vmem:[%s2272_s28 + $0x10] sm:$0xff] %v1073_v14  ;;  %v1041_v10 = vsel %vm1039_vm2, %v975_v7, 0.0 }
 0x41b   : > { %v1074_v9 = vadd.f32 %v1058_v53, %v1041_v10  ;;  %v1046_v16 = vsel %vm1039_vm2, %v980_v35, 0.0  ;;  %v957_v61 = vpop.xlane.xlu1 %956 }
 0x41c   : > { %v1079_v19 = vadd.f32 %v1063_v5, %v1046_v16  ;;  %v981_v13 = vsub.f32 0.0, %v957_v61 }
 0x41d   : > { %1122 = vst [vmem:[%s2272_s28 + $0x28] sm:$0xff] %v1074_v9  ;;  %v951_v55 = vpop.xlane.xlu0 %950 }
 0x41e   : > { %1127 = vst [vmem:[%s2272_s28 + $0xa0] sm:$0xff] %v1079_v19  ;;  %v1047_v32 = vsel %vm1039_vm2, %v981_v13, 0.0  ;;  %v978_v63 = vsub.f32 0.0, %v951_v55 }
 0x41f   : > { %v1080_v58 = vadd.f32 %v1064_v59, %v1047_v32  ;;  %v953_v26 = vpop.xlane.xlu1 %952 }
 0x420   : > { %v1044_v47 = vsel %vm1039_vm2, %v978_v63, 0.0  ;;  %v979_v31 = vsub.f32 0.0, %v953_v26 }
 0x421   : > { %1128 = vst [vmem:[%s2272_s28 + $0xb8] sm:$0xff] %v1080_v58  ;;  %v1077_v27 = vadd.f32 %v1061_v49, %v1044_v47  ;;  %v963_v28 = vpop.xlane.xlu0 %962 }
 0x422   : > { %v1045_v1 = vsel %vm1039_vm2, %v979_v31, 0.0  ;;  %v984_v56 = vsub.f32 0.0, %v963_v28 }
 0x423   : > { %1125 = vst [vmem:[%s2272_s28 + $0x70] sm:$0xff] %v1077_v27  ;;  %v1078_v45 = vadd.f32 %v1062_v38, %v1045_v1  ;;  %v965_v22 = vpop.xlane.xlu1 %964 }
 0x424   : > { %v1050_v21 = vsel %vm1039_vm2, %v984_v56, 0.0  ;;  %v985_v24 = vsub.f32 0.0, %v965_v22 }
 0x425   : > { %1126 = vst [vmem:[%s2272_s28 + $0x88] sm:$0xff] %v1078_v45  ;;  %v1083_v62 = vadd.f32 %v1067_v0, %v1050_v21  ;;  %v959_v11 = vpop.xlane.xlu0 %958 }
 0x426   : > { %v1051_v23 = vsel %vm1039_vm2, %v985_v24, 0.0  ;;  %v982_v25 = vsub.f32 0.0, %v959_v11 }
 0x427   : > { %1131 = vst [vmem:[%s2272_s28 + $0x100] sm:$0xff] %v1083_v62  ;;  %v1084_v12 = vadd.f32 %v1068_v3, %v1051_v23  ;;  %v961_v41 = vpop.xlane.xlu1 %960 }
 0x428   : > { %v1048_v34 = vsel %vm1039_vm2, %v982_v25, 0.0  ;;  %v983_v20 = vsub.f32 0.0, %v961_v41 }
 0x429   : > { %1132 = vst [vmem:[%s2272_s28 + $0x118] sm:$0xff] %v1084_v12  ;;  %v1081_v40 = vadd.f32 %v1065_v39, %v1048_v34 }
 0x42a   : > { %v1049_v42 = vsel %vm1039_vm2, %v983_v20, 0.0 }
 0x42b   : > { %1129 = vst [vmem:[%s2272_s28 + $0xd0] sm:$0xff] %v1081_v40  ;;  %v1082_v57 = vadd.f32 %v1066_v37, %v1049_v42 }
 0x42c   : > { %v971_v51 = vpop.xlane.xlu0 %970 }
 0x42d   : > { %1130 = vst [vmem:[%s2272_s28 + $0xe8] sm:$0xff] %v1082_v57  ;;  %v988_v46 = vsub.f32 0.0, %v971_v51 }
 0x42e   : > { %v973_v8 = vpop.xlane.xlu1 %972 }
 0x42f   : > { %v989_v17 = vsub.f32 0.0, %v973_v8  ;;  %v1054_v43 = vsel %vm1039_vm2, %v988_v46, 0.0 }
 0x430   : > { %v967_v15 = vpop.xlane.xlu0 %966 }
 0x431   : > { %v986_v54 = vsub.f32 0.0, %v967_v15  ;;  %v1055_v30 = vsel %vm1039_vm2, %v989_v17, 0.0 }
 0x432   : > { %v969_v52 = vpop.xlane.xlu1 %968 }
 0x433   : > { %v1052_v33 = vsel %vm1039_vm2, %v986_v54, 0.0  ;;  %v987_v44 = vsub.f32 0.0, %v969_v52 }
 0x434   : > { %v1085_v2 = vadd.f32 %v1069_v4, %v1052_v33  ;;  %v1036_v36 = vpop.xlane.xlu0 %1035 }
 0x435   : > { %v1053_v50 = vsel %vm1039_vm2, %v987_v44, 0.0  ;;  %v1071_v60 = vsel %vm1056_vm3, %v1036_v36, 0.0 }
 0x436   : > { %1133 = vst [vmem:[%s2272_s28 + $0x130] sm:$0xff] %v1085_v2  ;;  %v1086_v48 = vadd.f32 %v1070_v29, %v1053_v50  ;;  %v1087_v14 = vadd.f32 %v1071_v60, %v1054_v43  ;;  %v1038_v7 = vpop.xlane.xlu1 %1037 }
 0x437   : > { %v1072_v6 = vsel %vm1056_vm3, %v1038_v7, 0.0 }
 0x438   : > { %1134 = vst [vmem:[%s2272_s28 + $0x148] sm:$0xff] %v1086_v48  ;;  %1135 = vst [vmem:[%s2272_s28 + $0x160] sm:$0xff] %v1087_v14  ;;  %v1088_v35 = vadd.f32 %v1072_v6, %v1055_v30 }
 0x43a   : > { %1136 = vst [vmem:[%s2272_s28 + $0x178] sm:$0xff] %v1088_v35 }
 0x43b   : > { %1676 = shalt.err (!%p1673_p1)
}
 0x43c   : > { %s1677_s24 = scalar_lea.hbm %s2451_s11, 6144  ;;  %s1681_s16 = scalar_lea.hbm %s2505_s5, 12288 }
 0x43d   : > { %p1678_p13 = scmp.ne.s32.totalorder %s2451_s11, %s1677_s24  ;;  %p1682_p4 = scmp.lt.u32.totalorder %s2451_s11, %s2505_s5 }
 0x43e   : > { %p1683_p5 = scmp.lt.u32.totalorder %s1681_s16, %s1677_s24  ;;  %p1685_p11 = scmp.lt.u32.totalorder %s1677_s24, %s2451_s11 }
 0x43f   : > { %p1679_p6 = pnand %p1678_p13, %p2532_p0 }
 0x440   : > { %p1684_p8 = por %p1683_p5, %p1682_p4 }
 0x441   : > { %p1680_p10 = pneg %p1679_p6 }
 0x442   : > { %p1686_p2 = por %p1685_p11, %p1684_p8 }
 0x444   : > { %p1687_p3 = pnand %p1686_p2, %p1680_p10 }
 0x446   : > { %1690 = shalt.err (!%p1687_p3)
}
 0x447   : > { %s1741_s12 = smov 384   ;;  %s1742_s22 = smov 24  }
 0x448   : > { %1396 = dma.vmem_to_hbm [thread:$0]  (%p2532_p0), %s2455_s13, 6144, %s2451_s11, %s1138_s17, %s1741_s12, %s1741_s12, %s1742_s22  }
 0x449 PF: > { %s1167_s30 = sand.u32 1, %s1721_s18   ;;  %p2533_p7 = scmp.ne.s32.totalorder %s2513_s25, 0 }
 0x44a   : > { %p2534_p9 = scmp.ge.s32.totalorder %s1733_s21, 2  ;;  %s1168_s7 = scalar_lea.sflag [#allocation4], %s1167_s30 }
 0x44c   : > { %p1410_p12 = pnand %p2534_p9, %p2533_p7 }
 0x44e   : > { %1716 = dma.done.wait (!%p1410_p12), %s1168_s7, 6144  }
 0x44f   : > { %1718 = vsyncadd (!%p1410_p12), %s1168_s7, 4294961152  ;;  %p19_p1 = scmp.ge.s32.totalorder %s1889_s29, 4   ;;  %s2535_s18 = smov %s1725_s19 }
 0x450   : > { %s2536_s19 = smov %s1729_s20  ;;  %s2537_s20 = smov %s1905_s27 }
 0x451   : > { %s2538_s21 = smov %s1889_s29  ;;  %21 = sbr.rel (!%p19_p1) target bundleno = 6 (0x6), region = 93 }
 0x458   :  { %1173 = vsyncpa [#allocation3], 1 }
 0x459   :  { %1175 = vsyncpa [#allocation3 + $0x1], 1 }
 0x45a   :  { %1176 = vsyncpa [#allocation6], 1 }
 0x45b   :  { %1177 = vsyncpa [#allocation4], 1 }
 0x45c   :  { %1179 = vsyncpa [#allocation4 + $0x1], 1 }

</bundles_post_ra>
